<compile_context>
chip_gen: v7x
topology: tpu7x:2x2x1
jax: 0.10.0
libtpu: 0.0.40
codegen_flags: <defaults>
</compile_context>

<pallas_src>
import math
import jax
import jax.numpy as jnp
from jax.experimental import pallas as pl
from jax.experimental.pallas import tpu as pltpu


def autopad(k, p=None, d=1):
    """Pad to 'same' shape outputs (mirrors the PyTorch helper)."""
    if d > 1:
        k = d * (k - 1) + 1 if isinstance(k, int) else [d * (x - 1) + 1 for x in k]
    if p is None:
        p = k // 2 if isinstance(k, int) else [x // 2 for x in k]
    return p


def _round_up(x, m):
    return ((x + m - 1) // m) * m


def _largest_tile(padded, target, unit=128):
    """Largest multiple of `unit` that divides `padded` (a multiple of unit) and is <= target."""
    q = padded // unit
    cap = max(1, target // unit)
    best = 1
    for r in range(1, min(q, cap) + 1):
        if q % r == 0:
            best = r
    return best * unit


# ----------------------------- Pallas kernel -------------------------------
def _make_kernel(resident, tk):
    """GEMM + (bias, SiLU) epilogue; accumulates directly into the f32 output block."""

    def kernel(p_ref, w_ref, b_ref, o_ref):
        kk = pl.program_id(2)

        @pl.when(kk == 0)
        def _():
            o_ref[...] = jnp.zeros_like(o_ref)

        if resident and w_ref.shape[0] != tk:
            # Whole-K weight slab is resident in VMEM; slice the current K chunk.
            k0 = pl.multiple_of(kk * tk, tk)
            w = w_ref[pl.ds(k0, tk), :]
        else:
            w = w_ref[...]

        # MXU GEMM: bf16 x bf16 -> f32 accumulation, directly into the output block
        # (its block index is constant along the innermost k axis).
        o_ref[...] += jnp.dot(p_ref[...], w, preferred_element_type=jnp.float32)

        @pl.when(kk == pl.num_programs(2) - 1)
        def _():
            # BN scale already folded into the weights -> epilogue is bias + SiLU.
            y = o_ref[...] + b_ref[...]
            o_ref[...] = (y * jax.nn.sigmoid(y)).astype(o_ref.dtype)

    return kernel


def _conv_bn_silu_gemm(patches, w_mat, bias, *, tm, tn, tk, resident, vmem_limit_bytes):
    """patches: (Mp, Kp) bf16; w_mat: (Kp, Np) bf16; bias: (1, Np) f32 -> (Mp, Np) f32."""
    Mp, Kp = patches.shape
    Np = w_mat.shape[1]
    # Grid order: j (out channels) outermost, i (rows) middle, k (reduction) innermost.
    # With the resident (Kp, tn) weight block indexed only by j, each weight element is
    # fetched from HBM exactly once.
    grid = (Np // tn, Mp // tm, Kp // tk)
    if resident:
        w_spec = pl.BlockSpec((Kp, tn), lambda j, i, k: (0, j))
    else:
        w_spec = pl.BlockSpec((tk, tn), lambda j, i, k: (k, j))
    return pl.pallas_call(
        _make_kernel(resident, tk),
        out_shape=jax.ShapeDtypeStruct((Mp, Np), jnp.float32),
        grid_spec=pltpu.PrefetchScalarGridSpec(
            num_scalar_prefetch=0,
            grid=grid,
            in_specs=[
                pl.BlockSpec((tm, tk), lambda j, i, k: (i, k)),
                w_spec,
                pl.BlockSpec((1, tn), lambda j, i, k: (0, j)),
            ],
            out_specs=pl.BlockSpec((tm, tn), lambda j, i, k: (i, j)),
        ),
        compiler_params=pltpu.CompilerParams(
            dimension_semantics=("parallel", "parallel", "arbitrary"),
            vmem_limit_bytes=vmem_limit_bytes,
        ),
    )(patches, w_mat, bias)


# ------------------------------ Conv module --------------------------------
class ConvPallas:
    """Equivalent of ultralytics Conv (conv + BN + SiLU), BN in eval mode."""

    def __init__(self, c1, c2, k=1, s=1, p=None, g=1, d=1, act=True, key=None):
        assert g == 1, "groups > 1 not implemented"  # TODO(synk): grouped conv
        assert d == 1, "dilation > 1 not implemented"  # TODO(synk): dilated conv
        assert act is True, "only default SiLU activation implemented"  # TODO(synk): act modules
        self.c1, self.c2, self.k, self.s = c1, c2, k, s
        self.p = autopad(k, p, d)
        self.act = act

        if key is None:
            key = jax.random.PRNGKey(0)
        kw, kbn = jax.random.split(key)
        fan_in = c1 * k * k
        bound = 1.0 / math.sqrt(fan_in)
        self.weight = jax.random.uniform(
            kw, (c2, c1, k, k), jnp.float32, minval=-bound, maxval=bound
        )
        # BatchNorm2d params (eval mode uses running stats).
        self.gamma = 1.0 + 0.1 * jax.random.normal(kbn, (c2,), jnp.float32)
        self.beta = jnp.linspace(-0.1, 0.1, c2, dtype=jnp.float32)
        self.running_mean = jnp.linspace(-0.05, 0.05, c2, dtype=jnp.float32)
        self.running_var = jnp.linspace(0.9, 1.1, c2, dtype=jnp.float32)
        self.eps = 1e-5

    def __call__(self, x):
        """x: (N, C1, H, W) float32 -> (N, C2, Ho, Wo) float32."""
        N, C1, H, W = x.shape
        k, s, p = self.k, self.s, self.p
        Ho = (H + 2 * p - k) // s + 1
        Wo = (W + 2 * p - k) // s + 1
        M = N * Ho * Wo
        K = C1 * k * k
        Kp = _round_up(K, 128)        # lane-dense K, padded only to 128 (not tile size)
        Np = _round_up(self.c2, 128)  # lane-dense C2, padded only to 128

        # ---- im2col directly in bf16 NHWC; K padding folded into the concat ----
        # TODO(synk): implicit GEMM (extra (kh,kw) grid axis indexing shifted windows of the
        #             padded NHWC input) to remove the materialized patches array entirely.
        x_nhwc = jnp.transpose(x, (0, 2, 3, 1)).astype(jnp.bfloat16)
        x_pad = jnp.pad(x_nhwc, ((0, 0), (p, p), (p, p), (0, 0)))
        cols = []
        for kh in range(k):
            for kw_ in range(k):
                cols.append(
                    jax.lax.slice(
                        x_pad,
                        (0, kh, kw_, 0),
                        (N, kh + (Ho - 1) * s + 1, kw_ + (Wo - 1) * s + 1, C1),
                        (1, s, s, 1),
                    )
                )
        if Kp > K:
            cols.append(jnp.zeros((N, Ho, Wo, Kp - K), jnp.bfloat16))
        patches = jnp.concatenate(cols, axis=-1).reshape(M, Kp)  # (M, Kp) bf16

        # ---- fold eval-mode BN into the weights (per-c2 scale) and a bias vector ----
        inv_std = jax.lax.rsqrt(self.running_var + self.eps)
        scale = self.gamma * inv_std                    # (c2,)
        bias = self.beta - self.running_mean * scale    # (c2,)
        w_scaled = self.weight * scale[:, None, None, None]
        w_mat = jnp.transpose(w_scaled, (2, 3, 1, 0)).reshape(K, self.c2)  # (kh,kw,c1)->c2 order
        w_p = jnp.pad(w_mat, ((0, Kp - K), (0, Np - self.c2))).astype(jnp.bfloat16)
        bias_p = jnp.pad(bias.reshape(1, self.c2),
                         ((0, 0), (0, Np - self.c2))).astype(jnp.float32)

        # ---- tile sizing: large tiles, divisors of the 128-padded dims ----
        tm = min(512, _round_up(M, 8))
        tk = _largest_tile(Kp, 1024)
        tn = _largest_tile(Np, 512)
        Mp = _round_up(M, tm)
        # Make sure both TensorCores (v7x megacore) get work when the parallel grid is 1x1.
        if Mp // tm == 1 and Np // tn == 1 and tm % 16 == 0:
            tm //= 2

        patches_p = jnp.pad(patches, ((0, Mp - M), (0, 0)))  # only the small M tail

        # Keep the whole (Kp, tn) bf16 weight slab VMEM-resident when it comfortably fits
        # (threshold is double-buffered <= ~12 MiB so it also fits v7x's smaller VMEM).
        resident = (Kp * tn * 2) <= (6 * 1024 * 1024)

        # Explicit scoped-VMEM budget: double-buffered inputs + f32 output blocks + margin.
        w_bytes = (Kp * tn if resident else tk * tn) * 2
        need = (2 * tm * tk * 2) + (2 * w_bytes) + (2 * tm * tn * 4) + (2 * tn * 4)
        vmem_limit_bytes = int(min(max(2 * need, 32 * 1024 * 1024), 48 * 1024 * 1024))

        out = _conv_bn_silu_gemm(
            patches_p, w_p, bias_p,
            tm=tm, tn=tn, tk=tk, resident=resident, vmem_limit_bytes=vmem_limit_bytes,
        )

        out = out[:M, : self.c2].reshape(N, Ho, Wo, self.c2)
        return jnp.transpose(out, (0, 3, 1, 2))  # back to NCHW


# ------------------------------ references ----------------------------------
def _reference_bf16(conv: ConvPallas, x):
    """Reference with the same bf16 rounding (BN scale folded into weights, f32 accumulation)."""
    inv_std = jax.lax.rsqrt(conv.running_var + conv.eps)
    scale = conv.gamma * inv_std
    bias = (conv.beta - conv.running_mean * scale)[None, :, None, None]
    w_scaled = (conv.weight * scale[:, None, None, None]).astype(jnp.bfloat16)
    y = jax.lax.conv_general_dilated(
        x.astype(jnp.bfloat16),
        w_scaled,
        window_strides=(conv.s, conv.s),
        padding=[(conv.p, conv.p), (conv.p, conv.p)],
        dimension_numbers=("NCHW", "OIHW", "NCHW"),
        preferred_element_type=jnp.float32,
    ) + bias
    return y * jax.nn.sigmoid(y)


def _reference_f32(conv: ConvPallas, x):
    y = jax.lax.conv_general_dilated(
        x,
        conv.weight,
        window_strides=(conv.s, conv.s),
        padding=[(conv.p, conv.p), (conv.p, conv.p)],
        dimension_numbers=("NCHW", "OIHW", "NCHW"),
    )
    inv_std = 1.0 / jnp.sqrt(conv.running_var + conv.eps)
    scale = (conv.gamma * inv_std)[None, :, None, None]
    bias = (conv.beta - conv.gamma * conv.running_mean * inv_std)[None, :, None, None]
    y = y * scale + bias
    return y * jax.nn.sigmoid(y)


if __name__ == "__main__":
    key = jax.random.PRNGKey(0)
    kx, kp = jax.random.split(key)

    # Small shapes: batch=2, c1=4, c2=8, H=W=16, k=3, s=1 ("same" padding).
    x = jax.random.normal(kx, (2, 4, 16, 16), jnp.float32)
    conv = ConvPallas(c1=4, c2=8, k=3, s=1, key=kp)

    out = conv(x)
    out = jax.block_until_ready(out)
    assert out.shape == (2, 8, 16, 16)

    # Exact-path check: reference with the same bf16 rounding / BN folding as the kernel.
    ref_bf16 = jax.block_until_ready(_reference_bf16(conv, x))
    assert jnp.allclose(out, ref_bf16, atol=2e-3, rtol=2e-3), "mismatch vs bf16 reference"

    # Sanity check vs full-f32 reference (loose tolerance for bf16 GEMM inputs).
    ref_f32 = jax.block_until_ready(_reference_f32(conv, x))
    assert jnp.allclose(out, ref_f32, atol=5e-2, rtol=5e-2), "mismatch vs f32 reference"

    print("KERNEL_OK")
</pallas_src>

<mosaic_0001>
module attributes {stable_mosaic.version = 11 : i64} {
  func.func @kernel(%arg0: i32, %arg1: i32, %arg2: i32, %arg3: memref<256x128xbf16, #tpu.memory_space<vmem>>, %arg4: memref<128x128xbf16, #tpu.memory_space<vmem>>, %arg5: memref<1x128xf32, #tpu.memory_space<vmem>>, %arg6: memref<256x128xf32, #tpu.memory_space<vmem>>) attributes {dimension_semantics = [#tpu.dimension_semantics<parallel>, #tpu.dimension_semantics<parallel>, #tpu.dimension_semantics<arbitrary>], iteration_bounds = array<i64: 1, 2, 1>, scalar_prefetch = 0 : i64, scratch_operands = 0 : i64, tpu.core_type = #tpu.core_type<tc>, window_params = [{transform_indices = @transform_0, window_bounds = array<i64: 256, 128>}, {transform_indices = @transform_1, window_bounds = array<i64: 128, 128>}, {transform_indices = @transform_2, window_bounds = array<i64: 1, 128>}, {transform_indices = @transform_3, window_bounds = array<i64: 256, 128>}]} {
    %c0_i32 = arith.constant 0 : i32
    %0 = arith.cmpi eq, %arg2, %c0_i32 : i32
    %1 = arith.extui %0 : i1 to i32
    %c0_i32_0 = arith.constant 0 : i32
    %2 = arith.cmpi ne, %1, %c0_i32_0 : i32
    scf.if %2 {
      %cst_10 = arith.constant 0.000000e+00 : f32
      %12 = vector.broadcast %cst_10 : f32 to vector<256x128xf32>
      %c0_11 = arith.constant 0 : index
      %c0_12 = arith.constant 0 : index
      %13 = vector.load %arg6[%c0_11, %c0_12] : memref<256x128xf32, #tpu.memory_space<vmem>>, vector<256x128xf32>
      tpu.vector_store %arg6[%c0_11, %c0_12], %12 {strides = array<i32>} : memref<256x128xf32, #tpu.memory_space<vmem>>, vector<256x128xf32>,
    } else {
    }
    %c0 = arith.constant 0 : index
    %c0_1 = arith.constant 0 : index
    %3 = vector.load %arg4[%c0, %c0_1] : memref<128x128xbf16, #tpu.memory_space<vmem>>, vector<128x128xbf16>
    %c0_2 = arith.constant 0 : index
    %c0_3 = arith.constant 0 : index
    %4 = vector.load %arg6[%c0_2, %c0_3] : memref<256x128xf32, #tpu.memory_space<vmem>>, vector<256x128xf32>
    %c0_4 = arith.constant 0 : index
    %c0_5 = arith.constant 0 : index
    %5 = vector.load %arg3[%c0_4, %c0_5] : memref<256x128xbf16, #tpu.memory_space<vmem>>, vector<256x128xbf16>
    %cst = arith.constant dense<0.000000e+00> : vector<256x128xf32>
    %6 = tpu.matmul %5, %3, %cst {dimension_numbers = #tpu.dot_dimension_numbers<[1], [0], [0], [1], [0, 0, 1, 1], [], []>} : vector<256x128xbf16>, vector<128x128xbf16>, vector<256x128xf32> -> vector<256x128xf32>
    %7 = arith.addf %4, %6 : vector<256x128xf32>
    %c0_6 = arith.constant 0 : index
    %c0_7 = arith.constant 0 : index
    %8 = vector.load %arg6[%c0_6, %c0_7] : memref<256x128xf32, #tpu.memory_space<vmem>>, vector<256x128xf32>
    tpu.vector_store %arg6[%c0_6, %c0_7], %7 {strides = array<i32>} : memref<256x128xf32, #tpu.memory_space<vmem>>, vector<256x128xf32>,
    %c0_i32_8 = arith.constant 0 : i32
    %9 = arith.cmpi eq, %arg2, %c0_i32_8 : i32
    %10 = arith.extui %9 : i1 to i32
    %c0_i32_9 = arith.constant 0 : i32
    %11 = arith.cmpi ne, %10, %c0_i32_9 : i32
    scf.if %11 {
      %c0_10 = arith.constant 0 : index
      %c0_11 = arith.constant 0 : index
      %12 = vector.load %arg6[%c0_10, %c0_11] : memref<256x128xf32, #tpu.memory_space<vmem>>, vector<256x128xf32>
      %c0_12 = arith.constant 0 : index
      %c0_13 = arith.constant 0 : index
      %13 = vector.load %arg5[%c0_12, %c0_13] : memref<1x128xf32, #tpu.memory_space<vmem>>, vector<1x128xf32>
      %14 = vector.broadcast %13 : vector<1x128xf32> to vector<256x128xf32>
      %15 = arith.addf %12, %14 : vector<256x128xf32>
      %16 = arith.negf %15 : vector<256x128xf32>
      %17 = math.exp %16 : vector<256x128xf32>
      %cst_14 = arith.constant 1.000000e+00 : f32
      %18 = vector.broadcast %cst_14 : f32 to vector<256x128xf32>
      %19 = arith.addf %18, %17 : vector<256x128xf32>
      %20 = arith.divf %18, %19 : vector<256x128xf32>
      %21 = arith.mulf %15, %20 : vector<256x128xf32>
      %c0_15 = arith.constant 0 : index
      %c0_16 = arith.constant 0 : index
      %22 = vector.load %arg6[%c0_15, %c0_16] : memref<256x128xf32, #tpu.memory_space<vmem>>, vector<256x128xf32>
      tpu.vector_store %arg6[%c0_15, %c0_16], %21 {strides = array<i32>} : memref<256x128xf32, #tpu.memory_space<vmem>>, vector<256x128xf32>,
    } else {
    }
    return
  }
  func.func @transform_0(%arg0: i32, %arg1: i32, %arg2: i32) -> (i32, i32) {
    %c0_i32 = arith.constant 0 : i32
    return %arg1, %arg2 : i32, i32
  }
  func.func @transform_1(%arg0: i32, %arg1: i32, %arg2: i32) -> (i32, i32) {
    %c0_i32 = arith.constant 0 : i32
    %c0_i32_0 = arith.constant 0 : i32
    return %c0_i32, %arg0 : i32, i32
  }
  func.func @transform_2(%arg0: i32, %arg1: i32, %arg2: i32) -> (i32, i32) {
    %c0_i32 = arith.constant 0 : i32
    %c0_i32_0 = arith.constant 0 : i32
    return %c0_i32, %arg0 : i32, i32
  }
  func.func @transform_3(%arg0: i32, %arg1: i32, %arg2: i32) -> (i32, i32) {
    %c0_i32 = arith.constant 0 : i32
    return %arg1, %arg0 : i32, i32
  }
}

</mosaic_0001>

<bundles_post_ra>
// kernel: tpu_custom_call.1
= control target key start
LH: loop header
LB: loop body
LE: loop exit
PB: predicated region body
PF: predicated region fallthrough
CT: control target
= control target key end

     0   :  { %8 = vsyncpa [#allocation3], 0  ;;  %s2245_s0 = inlined_call_operand.hbm [shape: bf16[512,128], index: 0, kind: input, shape index: {}]   ;;  %s2246_s1 = inlined_call_operand.hbm [shape: bf16[128,128], index: 1, kind: input, shape index: {}]   ;;  %s2247_s2 = inlined_call_operand.vmem [shape: f32[1,128], index: 2, kind: input, shape index: {}]   ;;  %s2248_s3 = inlined_call_operand.hbm [shape: f32[512,128], index: 3, kind: output, shape index: {}]  }
   0x1   :  { %10 = vsyncpa [#allocation3 + $0x1], 0 }
   0x2   :  { %11 = vsyncpa [#allocation6], 0 }
   0x3   :  { %12 = vsyncpa [#allocation4], 0 }
   0x4   :  { %14 = vsyncpa [#allocation4 + $0x1], 0  ;;  %s1762_s12 = smov 0   ;;  %s1764_s13 = smov 0  }
   0x5   :  { %s1766_s14 = smov 0   ;;  %s1768_s15 = smov 0  }
   0x6   :  { %s1770_s16 = smov 0   ;;  %s1772_s17 = smov 0  }
   0x7 LB: > { %s1194_s18 = sadd.s32 4294967295, %s1733_s17   ;;  %s1195_s19 = sadd.s32 4294967294, %s1733_s17   ;;  %s1733_s17 = sphi %s1772_s17, %s20_s17   ;;  %s1729_s16 = sphi %s1770_s16, %s2272_s16   ;;  %s1725_s15 = sphi %s1768_s15, %s2271_s15   ;;  %s1721_s14 = sphi %s1766_s14, %s2270_s14   ;;  %s1717_s13 = sphi %s1764_s13, %s2269_s13   ;;  %s1713_s12 = sphi %s1762_s12, %s2268_s12  }
   0x8   : > { %p61_p0 = scmp.ne.s32.totalorder %s1717_s13, %s1713_s12  ;;  %p1796_p1 = scmp.eq.s32.totalorder %s1194_s18, 0 }
   0x9   : > { %p1800_p2 = scmp.eq.s32.totalorder %s1194_s18, 1  ;;  %p145_p3 = scmp.eq.s32.totalorder %s1195_s19, 1 }
   0xa   : > { %s2253_s20 = scalar_select %p1796_p1, 1, 0 }
   0xb   : > { %s2254_s21 = scalar_select %p1800_p2, 1, 0 }
   0xc   : > { %p1806_p4 = por %p1796_p1, %p61_p0  ;;  %p1196_p5 = scmp.ge.s32.totalorder %s1733_s17, 1 }
   0xd   : > { %p1811_p6 = por %p145_p3, %p61_p0  ;;  %p152_p7 = scmp.lt.s32.totalorder %s1733_s17, 3 }
   0xe   : > { %s2255_s22 = scalar_select %p1806_p4, 1, 0 }
   0xf   : > { %s2256_s23 = scalar_select %p1811_p6, 1, 0 }
  0x10   : > { %p1816_p8 = pnand %p1196_p5, %p152_p7  ;;  %s1735_s25 = smov [#allocation5]  }
  0x11   : > { %s166_s26 = sshll.u32 %s1735_s25, 4  ;;  %s35_s28 = sadd.s32 1, %s1729_s16  ;;  %s167_s26 = int_to_ptr.vmem [resolvable:$true] %s166_s26 }
  0x12   : > { %s2257_s24 = scalar_select %p1816_p8, 1, 0 }
  0x13   : > { %p1367_p9 = pneg %p1816_p8  ;;  %s1589_s4 = scalar_lea.hbm %s2246_s1, 1024 }
  0x14   : > { %p1590_p12 = scmp.ne.s32.totalorder %s2246_s1, %s1589_s4  ;;  %p1596_p5 = scmp.lt.u32.totalorder %s1589_s4, %s2246_s1 }
  0x15   : > { %p1825_p11 = pnand %p1367_p9, %p1796_p1 }
  0x17   : > { %p1591_p13 = pneg %p1825_p11 }
  0x19   : > { %p1592_p0 = pnand %p1591_p13, %p1590_p12 }
  0x1b   : > { %p1593_p3 = pneg %p1592_p0 }
  0x1d   : > { %p1598_p7 = pnand %p1596_p5, %p1593_p3 }
  0x1f   : > { %1601 = shalt.err (!%p1598_p7)
}
  0x20   : > { %s1602_s9 = scalar_lea.vmem %s167_s26, 1024  ;;  %p1610_p1 = scmp.lt.s32.totalorder %s167_s26, %s167_s26 }
  0x21   : > { %p1603_p9 = scmp.ne.s32.totalorder %s167_s26, %s1602_s9  ;;  %p1611_p4 = scmp.lt.s32.totalorder %s1602_s9, %s1602_s9 }
  0x23   : > { %p1605_p10 = pnand %p1603_p9, %p1591_p13  ;;  %p1612_p8 = por %p1611_p4, %p1610_p1 }
  0x25   : > { %p1606_p6 = pneg %p1605_p10 }
  0x27   : > { %p1613_p2 = pnand %p1612_p8, %p1606_p6 }
  0x29   : > { %1616 = shalt.err (!%p1613_p2)
}
  0x2a   : > { %s1736_s10 = smov 64   ;;  %s1737_s11 = smov 4  }
  0x2b   : > { %1370 = dma.hbm_to_vmem [thread:$0]  (!%p1825_p11), %s2246_s1, 1024, %s167_s26, [#allocation6], %s1736_s10, %s1736_s10, %s1737_s11  }
  0x2c   : > { %p37_p1 = scmp.ge.s32.totalorder %s35_s28, 2  ;;  %s48_s25 = sadd.s32 1, %s1721_s14 }
  0x2d   : > { %p55_p2 = scmp.ne.s32.totalorder %s1721_s14, %s1717_s13  ;;  %p56_p4 = scmp.eq.s32.totalorder %s1733_s17, 0 }
  0x2e   : > { %s2274_s28 = smov (%p37_p1, %s35_s28), 0  ;;  %p2260_p8 = scmp.ne.s32.totalorder %s2254_s21, 0 }
  0x2f   : > { %p1855_p6 = por %p56_p4, %p55_p2  ;;  %s43_s30 = ssub.s32 %s1729_s16, %s2274_s28 }
  0x30   : > { %p1861_p10 = por %p2260_p8, %p55_p2  ;;  %p1380_p12 = scmp.lt.s32.totalorder %s1733_s17, 2 }
  0x31   : > { %p46_p11 = scmp.eq.s32.totalorder %s43_s30, 0  ;;  %s186_s26 = sand.u32 1, %s1721_s14  }
  0x32   : > { %s1200_s4 = sshll.u32 %s186_s26, 7  ;;  %s1269_s6 = sshll.u32 %s1729_s16, 11 }
  0x33   : > { %s1870_s5 = scalar_select %p46_p11, %s1721_s14, %s48_s25  }
  0x34   : > { %s1876_s9 = scalar_lea.hbm %s2245_s0, %s1269_s6  ;;  %s190_s21 = scalar_lea.vmem [#allocation2], %s1200_s4 }
  0x35   : > { %s198_s18 = sshll.u32 %s190_s21, 4  ;;  %p1882_p13 = pnand %p1380_p12, %p1855_p6  ;;  %s1878_s18 = int_to_ptr.vmem [resolvable:$true] %s198_s18 }
  0x36   : > { %s1886_s25 = scalar_lea.sflag [#allocation3], %s186_s26  ;;  %s1617_s30 = scalar_lea.hbm %s1876_s9, 2048 }
  0x37   : > { %p1618_p0 = scmp.ne.s32.totalorder %s1876_s9, %s1617_s30  ;;  %p1619_p3 = pneg %p1882_p13 }
  0x38   : > { %s1622_s29 = scalar_lea.hbm %s2245_s0, 4096  ;;  %p1623_p9 = scmp.lt.u32.totalorder %s1876_s9, %s2245_s0 }
  0x39   : > { %p1620_p5 = pnand %p1619_p3, %p1618_p0  ;;  %p1624_p1 = scmp.lt.u32.totalorder %s1622_s29, %s1617_s30 }
  0x3a   : > { %p1626_p4 = scmp.lt.u32.totalorder %s1617_s30, %s1876_s9 }
  0x3b   : > { %p1621_p7 = pneg %p1620_p5  ;;  %p1625_p2 = por %p1624_p1, %p1623_p9 }
  0x3d   : > { %p1627_p6 = por %p1626_p4, %p1625_p2 }
  0x3f   : > { %p1628_p8 = pnand %p1627_p6, %p1621_p7 }
  0x41   : > { %1631 = shalt.err (!%p1628_p8)
}
  0x42   : > { %s1632_s26 = scalar_lea.vmem %s1878_s18, 2048  ;;  %s1738_s21 = smov [#allocation2]  }
  0x43   : > { %p1633_p12 = scmp.ne.s32.totalorder %s1878_s18, %s1632_s26  ;;  %s1637_s4 = sshll.u32 %s1738_s21, 4  ;;  %s1638_s4 = int_to_ptr.vmem [resolvable:$false] %s1637_s4 }
  0x44   : > { %s1639_s6 = scalar_lea.vmem %s1638_s4, 4096  ;;  %p1640_p5 = scmp.lt.s32.totalorder %s1878_s18, %s1638_s4 }
  0x45   : > { %p1635_p11 = pnand %p1633_p12, %p1619_p3  ;;  %p1641_p9 = scmp.lt.s32.totalorder %s1639_s6, %s1632_s26 }
  0x47   : > { %p1636_p0 = pneg %p1635_p11  ;;  %p1642_p1 = por %p1641_p9, %p1640_p5 }
  0x49   : > { %p1643_p2 = pnand %p1642_p1, %p1636_p0 }
  0x4b   : > { %1646 = shalt.err (!%p1643_p2)
}
  0x4c   : > { %1374 = dma.hbm_to_vmem [thread:$0]  (!%p1882_p13), %s1876_s9, 2048, %s1878_s18, %s1886_s25, %s1736_s10, %s1736_s10, %s1737_s11  }
  0x4d   : > { %p2263_p3 = scmp.ne.s32.totalorder %s2257_s24, 0 }
  0x4e   : > { %s1920_s30 = sand.u32 (!%p2263_p3), 1, %s1717_s13   ;;  %p2264_p7 = scmp.ne.s32.totalorder (!%p2263_p3), %s2255_s22, 0 }
  0x4f   : > { %210 = sbr.rel (%p2263_p3) target bundleno = 441 (0x1b9), region = 32  ;;  %s1204_s29 = sshll.u32 (!%p2263_p3), %s1920_s30, 7 }
  0x50   : > { %s213_s7 = scalar_lea.sflag (!%p2263_p3), [#allocation3], %s1920_s30  ;;  %s1924_s8 = scalar_lea.vmem (!%p2263_p3), [#allocation2], %s1204_s29 }
  0x56   : > { %1700 = dma.done.wait (%p2264_p7), %s213_s7, 2048  }
  0x57   : > { %1702 = vsyncadd (%p2264_p7), %s213_s7, 4294965248  ;;  %p2265_p13 = scmp.ne.s32.totalorder %s2253_s20, 0 }
  0x59   : > { %1704 = dma.done.wait (%p2265_p13), [#allocation6], 1024  }
  0x5a   : > { %1706 = vsyncadd (%p2265_p13), [#allocation6], 4294966272  ;;  %v1437_v0 = vld [vmem:[#allocation5] sm:$0xff]   ;;  %v1438_v1 = vld [vmem:[#allocation5 + $0x8] sm:$0xff]   ;;  %s1206_s24 = sshll.u32 %s1920_s30, 8  ;;  %s1270_s11 = sshll.u32 %s1725_s15, 12 }
  0x5b   : > { %1295 = vmatprep.subr.bf16.mxu0 %v1437_v0  ;;  %1343 = vmatprep.subr.bf16.mxu1 %v1437_v0  ;;  %v1439_v2 = vld [vmem:[#allocation5 + $0x10] sm:$0xff]   ;;  %v1440_v3 = vld [vmem:[#allocation5 + $0x18] sm:$0xff]   ;;  %v1445_v4 = vld [vmem:[%s1924_s8] sm:$0xff]   ;;  %s2067_s10 = scalar_lea.vmem [#allocation7], %s1206_s24  ;;  %s2190_s15 = scalar_lea.hbm %s2248_s3, %s1270_s11 }
  0x5c   : > { %1296 = vmatpush3.bf16.msra.mxu0 %v1437_v0  ;;  %1351 = vmatpush3.bf16.msra.mxu1 %v1437_v0  ;;  %v1446_v5 = vld [vmem:[%s1924_s8 + $0x40] sm:$0xff]   ;;  %v1442_v7 = vld [vmem:[#allocation5 + $0x28] sm:$0xff]   ;;  %v1443_v8 = vld [vmem:[#allocation5 + $0x30] sm:$0xff]   ;;  %s1082_s9 = sshll.u32 %s2067_s10, 4  ;;  %s1068_s25 = scalar_lea.sflag [#allocation4], %s1920_s30  ;;  %s2192_s9 = int_to_ptr.vmem [resolvable:$true] %s1082_s9 }
  0x5d   : > { %1297 = vmatprep.subr.bf16.mxu0 %v1438_v1  ;;  %1344 = vmatprep.subr.bf16.mxu1 %v1438_v1  ;;  %v1441_v6 = vld [vmem:[#allocation5 + $0x20] sm:$0xff]   ;;  %v1444_v9 = vld [vmem:[#allocation5 + $0x38] sm:$0xff]   ;;  %v1447_v10 = vld [vmem:[%s1924_s8 + $0x8] sm:$0xff]   ;;  %s1647_s26 = scalar_lea.vmem %s2192_s9, 4096  ;;  %s1739_s21 = smov [#allocation7]  }
  0x5e   : > { %1311 = vmatprep.mubr.bf16.mxu0 %v1445_v4  ;;  %1327 = vmatprep.mubr.bf16.mxu1 %v1446_v5  ;;  %v1448_v11 = vld [vmem:[%s1924_s8 + $0x48] sm:$0xff]   ;;  %v1449_v12 = vld [vmem:[%s1924_s8 + $0x10] sm:$0xff]   ;;  %v1451_v14 = vld [vmem:[%s1924_s8 + $0x18] sm:$0xff]   ;;  %p1648_p4 = scmp.ne.s32.totalorder %s2192_s9, %s1647_s26  ;;  %s1651_s4 = sshll.u32 %s1739_s21, 4  ;;  %s1652_s4 = int_to_ptr.vmem [resolvable:$false] %s1651_s4 }
  0x5f   : > { %v1450_v13 = vld [vmem:[%s1924_s8 + $0x50] sm:$0xff]   ;;  %v1452_v15 = vld [vmem:[%s1924_s8 + $0x58] sm:$0xff]   ;;  %v1453_v16 = vld [vmem:[%s1924_s8 + $0x20] sm:$0xff]   ;;  %s1653_s6 = scalar_lea.vmem %s1652_s4, 8192  ;;  %p1654_p12 = scmp.lt.s32.totalorder %s2192_s9, %s1652_s4 }
  0x60   : > { %1298 = vmatpush3.bf16.msra.mxu0 %v1438_v1  ;;  %1352 = vmatpush3.bf16.msra.mxu1 %v1438_v1  ;;  %v1454_v17 = vld [vmem:[%s1924_s8 + $0x60] sm:$0xff]   ;;  %v1455_v18 = vld [vmem:[%s1924_s8 + $0x28] sm:$0xff]   ;;  %v1457_v20 = vld [vmem:[%s1924_s8 + $0x30] sm:$0xff]   ;;  %p1649_p6 = pnand %p1648_p4, %p1861_p10  ;;  %p1655_p11 = scmp.lt.s32.totalorder %s1653_s6, %s1647_s26 }
  0x61   : > { %1299 = vmatprep.subr.bf16.mxu0 %v1439_v2  ;;  %1345 = vmatprep.subr.bf16.mxu1 %v1439_v2  ;;  %v1456_v19 = vld [vmem:[%s1924_s8 + $0x68] sm:$0xff]   ;;  %v1458_v21 = vld [vmem:[%s1924_s8 + $0x70] sm:$0xff]   ;;  %v1459_v22 = vld [vmem:[%s1924_s8 + $0x38] sm:$0xff]  }
  0x62   : > { %v1460_v23 = vld [vmem:[%s1924_s8 + $0x78] sm:$0xff]   ;;  %v1953_v25 = vld [vmem:[%s2247_s2] ss:$0 sm:$0xff]  ;;  %p1650_p8 = pneg %p1649_p6  ;;  %p1656_p0 = por %p1655_p11, %p1654_p12 }
  0x64   : > { %1300 = vmatpush3.bf16.msra.mxu0 %v1439_v2  ;;  %1353 = vmatpush3.bf16.msra.mxu1 %v1439_v2  ;;  %p1657_p5 = pnand %p1656_p0, %p1650_p8 }
  0x65   : > { %1301 = vmatprep.subr.bf16.mxu0 %v1440_v3  ;;  %1346 = vmatprep.subr.bf16.mxu1 %v1440_v3 }
  0x68   : > { %1302 = vmatpush3.bf16.msra.mxu0 %v1440_v3  ;;  %1354 = vmatpush3.bf16.msra.mxu1 %v1440_v3 }
  0x69   : > { %1303 = vmatprep.subr.bf16.mxu0 %v1441_v6  ;;  %1347 = vmatprep.subr.bf16.mxu1 %v1441_v6 }
  0x6c   : > { %1304 = vmatpush3.bf16.msra.mxu0 %v1441_v6  ;;  %1355 = vmatpush3.bf16.msra.mxu1 %v1441_v6 }
  0x6d   : > { %1305 = vmatprep.subr.bf16.mxu0 %v1442_v7  ;;  %1348 = vmatprep.subr.bf16.mxu1 %v1442_v7 }
  0x70   : > { %1306 = vmatpush3.bf16.msra.mxu0 %v1442_v7  ;;  %1356 = vmatpush3.bf16.msra.mxu1 %v1442_v7 }
  0x71   : > { %1307 = vmatprep.subr.bf16.mxu0 %v1443_v8  ;;  %1349 = vmatprep.subr.bf16.mxu1 %v1443_v8 }
  0x74   : > { %1308 = vmatpush3.bf16.msra.mxu0 %v1443_v8  ;;  %1357 = vmatpush3.bf16.msra.mxu1 %v1443_v8 }
  0x75   : > { %1309 = vmatprep.subr.bf16.mxu0 %v1444_v9  ;;  %1350 = vmatprep.subr.bf16.mxu1 %v1444_v9 }
  0x78   : > { %1310 = vmatpush3.bf16.msra.mxu0 %v1444_v9  ;;  %1358 = vmatpush3.bf16.msra.mxu1 %v1444_v9 }
  0x7b   : > { %1312 = vmatmul.mubr.bf16.vlgmr.msra.gmra.mrb[0].mxu0 %v1447_v10  ;;  %1328 = vmatmul.mubr.bf16.vlgmr.msra.gmra.mrb[0].mxu1 %v1448_v11 }
  0x7c   : > { %1315 = vmatprep.mubr.bf16.mxu0 %v1449_v12  ;;  %1331 = vmatprep.mubr.bf16.mxu1 %v1450_v13 }
  0x83   : > { %1316 = vmatmul.mubr.bf16.gmra.mrb[4].mxu0 %v1451_v14  ;;  %1332 = vmatmul.mubr.bf16.gmra.mrb[4].mxu1 %v1452_v15 }
  0x84   : > { %1319 = vmatprep.mubr.bf16.mxu0 %v1453_v16  ;;  %1335 = vmatprep.mubr.bf16.mxu1 %v1454_v17 }
  0x8b   : > { %1320 = vmatmul.mubr.bf16.gmra.mrb[8].mxu0 %v1455_v18  ;;  %1336 = vmatmul.mubr.bf16.gmra.mrb[8].mxu1 %v1456_v19 }
  0x8c   : > { %1323 = vmatprep.mubr.bf16.mxu0 %v1457_v20  ;;  %1339 = vmatprep.mubr.bf16.mxu1 %v1458_v21 }
  0x93   : > { %1324 = vmatmul.mubr.bf16.gmra.mrb[12].mxu0 %v1459_v22  ;;  %1340 = vmatmul.mubr.bf16.gmra.mrb[12].mxu1 %v1460_v23 }
 0x14e   : > { %v1313_v24 = vpop.f32.mrb[0].mxu0  ;;  %v1329_v26 = vpop.f32.mrb[0].mxu1 }
 0x14f   : > { %v546_v27 = vpop.f32.mrb[1].mxu0  ;;  %v610_v28 = vpop.f32.mrb[1].mxu1  ;;  %v1956_v31 = vadd.f32 %v1313_v24, %v1953_v25  ;;  %v1959_v32 = vadd.f32 %v1329_v26, %v1953_v25 }
 0x150   : > { %v1314_v29 = vpop.f32.mrb[2].mxu0  ;;  %v1330_v30 = vpop.f32.mrb[2].mxu1  ;;  %v1962_v35 = vadd.f32 %v1953_v25, %v546_v27  ;;  %v1965_v36 = vadd.f32 %v1953_v25, %v610_v28 }
 0x151   : > { %v549_v33 = vpop.f32.mrb[3].mxu0  ;;  %v613_v34 = vpop.f32.mrb[3].mxu1  ;;  %v1234_v37 = vmul.f32 -1.442695, %v1956_v31  ;;  %v1250_v38 = vmul.f32 -1.442695, %v1959_v32  ;;  %v1970_v39 = vadd.f32 %v1314_v29, %v1953_v25  ;;  %v1973_v40 = vadd.f32 %v1330_v30, %v1953_v25 }
 0x152   : > { %v1232_v41 = vmul.f32 -1.442695, %v1962_v35  ;;  %v1248_v42 = vmul.f32 -1.442695, %v1965_v36  ;;  %v1978_v43 = vadd.f32 %v1953_v25, %v549_v33  ;;  %v1981_v44 = vadd.f32 %v1953_v25, %v613_v34 }
 0x153   : > { %1461 = vpow2.f32 %v1234_v37  ;;  %v1235_v45 = vmul.f32 -1.442695, %v1970_v39  ;;  %v1251_v46 = vmul.f32 -1.442695, %v1973_v40 }
 0x154   : > { %1463 = vpow2.f32 %v1250_v38  ;;  %v1233_v49 = vmul.f32 -1.442695, %v1978_v43  ;;  %v1249_v52 = vmul.f32 -1.442695, %v1981_v44 }
 0x155   : > { %1465 = vpow2.f32 %v1232_v41 }
 0x156   : > { %v1317_v47 = vpop.f32.mrb[4].mxu0  ;;  %v1333_v48 = vpop.f32.mrb[4].mxu1  ;;  %1467 = vpow2.f32 %v1248_v42 }
 0x157   : > { %v562_v50 = vpop.f32.mrb[5].mxu0  ;;  %v626_v51 = vpop.f32.mrb[5].mxu1  ;;  %1469 = vpow2.f32 %v1235_v45  ;;  %v1988_v55 = vadd.f32 %v1317_v47, %v1953_v25  ;;  %v1991_v56 = vadd.f32 %v1333_v48, %v1953_v25 }
 0x158   : > { %v1318_v53 = vpop.f32.mrb[6].mxu0  ;;  %v1334_v54 = vpop.f32.mrb[6].mxu1  ;;  %1471 = vpow2.f32 %v1251_v46  ;;  %v1994_v59 = vadd.f32 %v1953_v25, %v562_v50  ;;  %v1997_v60 = vadd.f32 %v1953_v25, %v626_v51 }
 0x159   : > { %v565_v57 = vpop.f32.mrb[7].mxu0  ;;  %v629_v58 = vpop.f32.mrb[7].mxu1  ;;  %1473 = vpow2.f32 %v1233_v49  ;;  %v1238_v61 = vmul.f32 -1.442695, %v1988_v55  ;;  %v1254_v62 = vmul.f32 -1.442695, %v1991_v56  ;;  %v2002_v63 = vadd.f32 %v1318_v53, %v1953_v25 }
 0x15a   : > { %1475 = vpow2.f32 %v1249_v52  ;;  %v1236_v0 = vmul.f32 -1.442695, %v1994_v59  ;;  %v1252_v1 = vmul.f32 -1.442695, %v1997_v60  ;;  %v2018_v20 = vadd.f32 %v1334_v54, %v1953_v25 }
 0x15b   : > { %1477 = vpow2.f32 %v1238_v61  ;;  %v1239_v2 = vmul.f32 -1.442695, %v2002_v63  ;;  %v2021_v23 = vadd.f32 %v1953_v25, %v565_v57  ;;  %v2024_v27 = vadd.f32 %v1953_v25, %v629_v58 }
 0x15c   : > { %1479 = vpow2.f32 %v1254_v62  ;;  %v1255_v38 = vmul.f32 -1.442695, %v2018_v20 }
 0x15d   : > { %v1462_v5 = vpop.eup %1461  ;;  %1481 = vpow2.f32 %v1236_v0  ;;  %v1237_v48 = vmul.f32 -1.442695, %v2021_v23  ;;  %v1253_v54 = vmul.f32 -1.442695, %v2024_v27 }
 0x15e   : > { %v1321_v3 = vpop.f32.mrb[8].mxu0  ;;  %v1337_v4 = vpop.f32.mrb[8].mxu1  ;;  %v909_v9 = vadd.f32 1.0, %v1462_v5  ;;  %1483 = vpow2.f32 %v1252_v1 }
 0x15f   : > { %v578_v6 = vpop.f32.mrb[9].mxu0  ;;  %v2007_v7 = vpop.f32.mrb[9].mxu1  ;;  %1485 = vpow2.f32 %v1239_v2  ;;  %v2032_v41 = vadd.f32 %v1321_v3, %v1953_v25  ;;  %v2040_v49 = vadd.f32 %v1337_v4, %v1953_v25 }
 0x160   : > { %v1464_v8 = vpop.eup %1463  ;;  %v2009_v10 = vpop.f32.mrb[10].mxu0  ;;  %1487 = vrcp.f32 %v909_v9  ;;  %v2053_v0 = vadd.f32 %v1953_v25, %v578_v6 }
 0x161   : > { %v2011_v11 = vpop.f32.mrb[10].mxu1  ;;  %v1466_v12 = vpop.eup %1465  ;;  %v925_v13 = vadd.f32 1.0, %v1464_v8  ;;  %v1242_v3 = vmul.f32 -1.442695, %v2032_v41  ;;  %v1258_v8 = vmul.f32 -1.442695, %v2040_v49 }
 0x162   : > { %v2013_v14 = vpop.f32.mrb[11].mxu0  ;;  %v1468_v15 = vpop.eup %1467  ;;  %v907_v16 = vadd.f32 1.0, %v1466_v12 }
 0x163   : > { %v2015_v17 = vpop.f32.mrb[11].mxu1  ;;  %v1470_v18 = vpop.eup %1469  ;;  %1489 = vrcp.f32 %v925_v13  ;;  %v923_v19 = vadd.f32 1.0, %v1468_v15  ;;  %v2060_v13 = vadd.f32 %v1953_v25, %v2007_v7  ;;  %v2073_v7 = vadd.f32 %v2011_v11, %v1953_v25 }
 0x164   : > { %v1472_v21 = vpop.eup %1471  ;;  %1491 = vrcp.f32 %v907_v16  ;;  %v910_v22 = vadd.f32 1.0, %v1470_v18  ;;  %v2065_v16 = vadd.f32 %v2009_v10, %v1953_v25 }
 0x165   : > { %v1474_v24 = vpop.eup %1473  ;;  %1493 = vrcp.f32 %v923_v19  ;;  %v926_v26 = vadd.f32 1.0, %v1472_v21  ;;  %v1240_v19 = vmul.f32 -1.442695, %v2053_v0  ;;  %v2080_v21 = vadd.f32 %v1953_v25, %v2013_v14 }
 0x166   : > { %v1476_v28 = vpop.eup %1475  ;;  %1495 = vrcp.f32 %v910_v22  ;;  %v908_v29 = vadd.f32 1.0, %v1474_v24  ;;  %v2026_v30 = vpop.f32.mrb[12].mxu0  ;;  %v1256_v11 = vmul.f32 -1.442695, %v2060_v13  ;;  %v2087_v24 = vadd.f32 %v1953_v25, %v2015_v17 }
 0x167   : > { %v2028_v33 = vpop.f32.mrb[12].mxu1  ;;  %v1478_v34 = vpop.eup %1477  ;;  %1497 = vrcp.f32 %v926_v26  ;;  %v924_v37 = vadd.f32 1.0, %v1476_v28  ;;  %v1243_v14 = vmul.f32 -1.442695, %v2065_v16  ;;  %v2094_v28 = vadd.f32 %v2026_v30, %v1953_v25 }
 0x168   : > { %v2034_v42 = vpop.f32.mrb[13].mxu0  ;;  %v2036_v45 = vpop.f32.mrb[13].mxu1  ;;  %1499 = vrcp.f32 %v908_v29  ;;  %v913_v47 = vadd.f32 1.0, %v1478_v34  ;;  %v1259_v17 = vmul.f32 -1.442695, %v2073_v7  ;;  %v2101_v34 = vadd.f32 %v2028_v33, %v1953_v25 }
 0x169   : > { %v1480_v46 = vpop.eup %1479  ;;  %v2042_v50 = vpop.f32.mrb[14].mxu0  ;;  %1501 = vrcp.f32 %v924_v37  ;;  %v1241_v30 = vmul.f32 -1.442695, %v2080_v21 }
 0x16a   : > { %v2044_v51 = vpop.f32.mrb[14].mxu1  ;;  %v1482_v52 = vpop.eup %1481  ;;  %v929_v53 = vadd.f32 1.0, %v1480_v46  ;;  %1503 = vrcp.f32 %v913_v47  ;;  %v1257_v46 = vmul.f32 -1.442695, %v2087_v24 }
 0x16b   : > { %v2048_v57 = vpop.f32.mrb[15].mxu0  ;;  %v2050_v58 = vpop.f32.mrb[15].mxu1  ;;  %v911_v62 = vadd.f32 1.0, %v1482_v52 }
 0x16c   : > { %v1484_v61 = vpop.eup %1483  ;;  %1505 = vrcp.f32 %v929_v53 }
 0x16d   : > { %v1486_v1 = vpop.eup %1485  ;;  %v927_v2 = vadd.f32 1.0, %v1484_v61  ;;  %1507 = vrcp.f32 %v911_v62 }
 0x16e   : > { %v1488_v4 = vpop.eup %1487  ;;  %v914_v5 = vadd.f32 1.0, %v1486_v1 }
 0x16f   : > { %v1490_v9 = vpop.eup %1489  ;;  %v1005_v12 = vmul.f32 %v1488_v4, %v1956_v31  ;;  %1509 = vrcp.f32 %v927_v2 }
 0x170   : > { %v1492_v6 = vpop.eup %1491  ;;  %v1021_v15 = vmul.f32 %v1490_v9, %v1959_v32  ;;  %1511 = vrcp.f32 %v914_v5 }
 0x171   : > { %v1494_v18 = vpop.eup %1493  ;;  %1037 = vst [vmem:[%s2067_s10 + $0x10] sm:$0xff] %v1005_v12  ;;  %v1003_v31 = vmul.f32 %v1492_v6, %v1962_v35  ;;  %1513 = vpow2.f32 %v1255_v38 }
 0x172   : > { %v1496_v32 = vpop.eup %1495  ;;  %1053 = vst [vmem:[%s2067_s10 + $0x90] sm:$0xff] %v1021_v15  ;;  %v1019_v10 = vmul.f32 %v1494_v18, %v1965_v36  ;;  %1515 = vpow2.f32 %v1237_v48 }
 0x173   : > { %v1498_v22 = vpop.eup %1497  ;;  %1035 = vst [vmem:[%s2067_s10] sm:$0xff] %v1003_v31  ;;  %v1006_v35 = vmul.f32 %v1496_v32, %v1970_v39  ;;  %1517 = vpow2.f32 %v1253_v54  ;;  %v2123_v32 = vadd.f32 %v1953_v25, %v2034_v42  ;;  %v2135_v42 = vadd.f32 %v2044_v51, %v1953_v25 }
 0x174   : > { %v1500_v36 = vpop.eup %1499  ;;  %1051 = vst [vmem:[%s2067_s10 + $0x80] sm:$0xff] %v1019_v10  ;;  %v1022_v26 = vmul.f32 %v1498_v22, %v1973_v40  ;;  %1519 = vpow2.f32 %v1242_v3  ;;  %v2127_v22 = vadd.f32 %v1953_v25, %v2036_v45  ;;  %v2145_v51 = vadd.f32 %v1953_v25, %v2050_v58 }
 0x175   : > { %v1502_v39 = vpop.eup %1501  ;;  %1038 = vst [vmem:[%s2067_s10 + $0x18] sm:$0xff] %v1006_v35  ;;  %v1004_v29 = vmul.f32 %v1500_v36, %v1978_v43  ;;  %1521 = vpow2.f32 %v1258_v8  ;;  %v2131_v36 = vadd.f32 %v2042_v50, %v1953_v25  ;;  %v1244_v45 = vmul.f32 -1.442695, %v2123_v32 }
 0x176   : > { %v1504_v40 = vpop.eup %1503  ;;  %1054 = vst [vmem:[%s2067_s10 + $0x98] sm:$0xff] %v1022_v26  ;;  %v1020_v37 = vmul.f32 %v1502_v39, %v1981_v44  ;;  %1523 = vpow2.f32 %v1240_v19  ;;  %v1246_v44 = vmul.f32 -1.442695, %v2094_v28 }
 0x177   : > { %v1506_v38 = vpop.eup %1505  ;;  %1036 = vst [vmem:[%s2067_s10 + $0x8] sm:$0xff] %v1004_v29  ;;  %v1009_v43 = vmul.f32 %v1504_v40, %v1988_v55  ;;  %1525 = vpow2.f32 %v1256_v11  ;;  %v1262_v55 = vmul.f32 -1.442695, %v2101_v34 }
 0x178   : > { %v1508_v47 = vpop.eup %1507  ;;  %1052 = vst [vmem:[%s2067_s10 + $0x88] sm:$0xff] %v1020_v37  ;;  %v1025_v33 = vmul.f32 %v1506_v38, %v1991_v56  ;;  %1527 = vpow2.f32 %v1243_v14  ;;  %v1260_v37 = vmul.f32 -1.442695, %v2127_v22 }
 0x179   : > { %v1510_v48 = vpop.eup %1509  ;;  %1041 = vst [vmem:[%s2067_s10 + $0x30] sm:$0xff] %v1009_v43  ;;  %v1007_v52 = vmul.f32 %v1508_v47, %v1994_v59  ;;  %1529 = vpow2.f32 %v1259_v17  ;;  %v2140_v17 = vadd.f32 %v1953_v25, %v2048_v57  ;;  %v1247_v43 = vmul.f32 -1.442695, %v2131_v36 }
 0x17a   : > { %v1512_v53 = vpop.eup %1511  ;;  %1057 = vst [vmem:[%s2067_s10 + $0xb0] sm:$0xff] %v1025_v33  ;;  %v1023_v54 = vmul.f32 %v1510_v48, %v1997_v60  ;;  %1531 = vpow2.f32 %v1241_v30  ;;  %v1263_v47 = vmul.f32 -1.442695, %v2135_v42 }
 0x17b   : > { %v1514_v61 = vpop.eup %1513  ;;  %1039 = vst [vmem:[%s2067_s10 + $0x20] sm:$0xff] %v1007_v52  ;;  %v1010_v56 = vmul.f32 %v1512_v53, %v2002_v63  ;;  %1533 = vpow2.f32 %v1257_v46  ;;  %v1245_v25 = vmul.f32 -1.442695, %v2140_v17 }
 0x17c   : > { %v1516_v62 = vpop.eup %1515  ;;  %1055 = vst [vmem:[%s2067_s10 + $0xa0] sm:$0xff] %v1023_v54  ;;  %v930_v1 = vadd.f32 1.0, %v1514_v61  ;;  %1535 = vpow2.f32 %v1246_v44 }
 0x17d   : > { %v1518_v2 = vpop.eup %1517  ;;  %1042 = vst [vmem:[%s2067_s10 + $0x38] sm:$0xff] %v1010_v56  ;;  %v912_v59 = vadd.f32 1.0, %v1516_v62  ;;  %1537 = vpow2.f32 %v1262_v55 }
 0x17e   : > { %v1520_v3 = vpop.eup %1519  ;;  %1539 = vrcp.f32 %v930_v1  ;;  %v928_v4 = vadd.f32 1.0, %v1518_v2 }
 0x17f   : > { %v1522_v5 = vpop.eup %1521  ;;  %1541 = vrcp.f32 %v912_v59  ;;  %v917_v60 = vadd.f32 1.0, %v1520_v3 }
 0x180   : > { %v1524_v8 = vpop.eup %1523  ;;  %1543 = vrcp.f32 %v928_v4  ;;  %v933_v9 = vadd.f32 1.0, %v1522_v5 }
 0x181   : > { %v1526_v12 = vpop.eup %1525  ;;  %1545 = vrcp.f32 %v917_v60  ;;  %v915_v63 = vadd.f32 1.0, %v1524_v8 }
 0x182   : > { %v1528_v6 = vpop.eup %1527  ;;  %1547 = vrcp.f32 %v933_v9  ;;  %v931_v15 = vadd.f32 1.0, %v1526_v12 }
 0x183   : > { %v1530_v18 = vpop.eup %1529  ;;  %1549 = vrcp.f32 %v915_v63  ;;  %v918_v31 = vadd.f32 1.0, %v1528_v6 }
 0x184   : > { %v1532_v10 = vpop.eup %1531  ;;  %1551 = vrcp.f32 %v931_v15  ;;  %v934_v19 = vadd.f32 1.0, %v1530_v18 }
 0x185   : > { %v1534_v35 = vpop.eup %1533  ;;  %1553 = vrcp.f32 %v918_v31  ;;  %v916_v11 = vadd.f32 1.0, %v1532_v10 }
 0x186   : > { %v1536_v26 = vpop.eup %1535  ;;  %1555 = vrcp.f32 %v934_v19  ;;  %v932_v14 = vadd.f32 1.0, %v1534_v35 }
 0x187   : > { %v1538_v39 = vpop.eup %1537  ;;  %1557 = vrcp.f32 %v916_v11  ;;  %v921_v29 = vadd.f32 1.0, %v1536_v26 }
 0x188   : > { %v1540_v40 = vpop.eup %1539  ;;  %1559 = vrcp.f32 %v932_v14  ;;  %v937_v50 = vadd.f32 1.0, %v1538_v39 }
 0x189   : > { %v1542_v30 = vpop.eup %1541  ;;  %v1026_v38 = vmul.f32 %v1540_v40, %v2018_v20  ;;  %1561 = vrcp.f32 %v921_v29 }
 0x18a   : > { %v1544_v46 = vpop.eup %1543  ;;  %v1008_v57 = vmul.f32 %v1542_v30, %v2021_v23  ;;  %1563 = vrcp.f32 %v937_v50  ;;  %v1261_v23 = vmul.f32 -1.442695, %v2145_v51 }
 0x18b   : > { %v1546_v33 = vpop.eup %1545  ;;  %1058 = vst [vmem:[%s2067_s10 + $0xb8] sm:$0xff] %v1026_v38  ;;  %v1024_v44 = vmul.f32 %v1544_v46, %v2024_v27  ;;  %1565 = vpow2.f32 %v1244_v45 }
 0x18c   : > { %v1548_v20 = vpop.eup %1547  ;;  %1040 = vst [vmem:[%s2067_s10 + $0x28] sm:$0xff] %v1008_v57  ;;  %v1013_v58 = vmul.f32 %v1546_v33, %v2032_v41  ;;  %1567 = vpow2.f32 %v1260_v37 }
 0x18d   : > { %v1550_v48 = vpop.eup %1549  ;;  %1056 = vst [vmem:[%s2067_s10 + $0xa8] sm:$0xff] %v1024_v44  ;;  %v1029_v52 = vmul.f32 %v1548_v20, %v2040_v49  ;;  %1569 = vpow2.f32 %v1247_v43 }
 0x18e   : > { %v1552_v55 = vpop.eup %1551  ;;  %1045 = vst [vmem:[%s2067_s10 + $0x50] sm:$0xff] %v1013_v58  ;;  %v1011_v27 = vmul.f32 %v1550_v48, %v2053_v0  ;;  %1571 = vpow2.f32 %v1263_v47 }
 0x18f   : > { %v1554_v53 = vpop.eup %1553  ;;  %1061 = vst [vmem:[%s2067_s10 + $0xd0] sm:$0xff] %v1029_v52  ;;  %v1027_v41 = vmul.f32 %v1552_v55, %v2060_v13  ;;  %1573 = vpow2.f32 %v1245_v25 }
 0x190   : > { %v1556_v54 = vpop.eup %1555  ;;  %1043 = vst [vmem:[%s2067_s10 + $0x40] sm:$0xff] %v1011_v27  ;;  %v1014_v61 = vmul.f32 %v1554_v53, %v2065_v16  ;;  %1575 = vpow2.f32 %v1261_v23 }
 0x191   : > { %v1558_v49 = vpop.eup %1557  ;;  %1059 = vst [vmem:[%s2067_s10 + $0xc0] sm:$0xff] %v1027_v41  ;;  %v1030_v56 = vmul.f32 %v1556_v54, %v2073_v7 }
 0x192   : > { %v1560_v0 = vpop.eup %1559  ;;  %1046 = vst [vmem:[%s2067_s10 + $0x58] sm:$0xff] %v1014_v61  ;;  %v1012_v62 = vmul.f32 %v1558_v49, %v2080_v21 }
 0x193   : > { %v1562_v1 = vpop.eup %1561  ;;  %1062 = vst [vmem:[%s2067_s10 + $0xd8] sm:$0xff] %v1030_v56  ;;  %v1028_v13 = vmul.f32 %v1560_v0, %v2087_v24 }
 0x194   : > { %v1564_v2 = vpop.eup %1563  ;;  %1044 = vst [vmem:[%s2067_s10 + $0x48] sm:$0xff] %v1012_v62  ;;  %v1017_v59 = vmul.f32 %v1562_v1, %v2094_v28 }
 0x195   : > { %v1566_v16 = vpop.eup %1565  ;;  %1060 = vst [vmem:[%s2067_s10 + $0xc8] sm:$0xff] %v1028_v13  ;;  %v1033_v3 = vmul.f32 %v1564_v2, %v2101_v34 }
 0x196   : > { %v1568_v4 = vpop.eup %1567  ;;  %1049 = vst [vmem:[%s2067_s10 + $0x70] sm:$0xff] %v1017_v59  ;;  %v919_v7 = vadd.f32 1.0, %v1566_v16 }
 0x197   : > { %v1570_v5 = vpop.eup %1569  ;;  %1065 = vst [vmem:[%s2067_s10 + $0xf0] sm:$0xff] %v1033_v3  ;;  %v935_v60 = vadd.f32 1.0, %v1568_v4 }
 0x198   : > { %v1572_v8 = vpop.eup %1571  ;;  %1577 = vrcp.f32 %v919_v7  ;;  %v922_v21 = vadd.f32 1.0, %v1570_v5 }
 0x199   : > { %v1574_v9 = vpop.eup %1573  ;;  %1579 = vrcp.f32 %v935_v60  ;;  %v938_v24 = vadd.f32 1.0, %v1572_v8 }
 0x19a   : > { %v1576_v28 = vpop.eup %1575  ;;  %1581 = vrcp.f32 %v922_v21  ;;  %v920_v12 = vadd.f32 1.0, %v1574_v9 }
 0x19b   : > { %1583 = vrcp.f32 %v938_v24  ;;  %v936_v34 = vadd.f32 1.0, %v1576_v28 }
 0x19c   : > { %1585 = vrcp.f32 %v920_v12 }
 0x19d   : > { %1587 = vrcp.f32 %v936_v34 }
 0x1a2   : > { %v1578_v63 = vpop.eup %1577 }
 0x1a3   : > { %v1580_v6 = vpop.eup %1579  ;;  %v1015_v15 = vmul.f32 %v1578_v63, %v2123_v32 }
 0x1a4   : > { %v1582_v18 = vpop.eup %1581  ;;  %v1031_v31 = vmul.f32 %v1580_v6, %v2127_v22 }
 0x1a5   : > { %v1584_v10 = vpop.eup %1583  ;;  %1047 = vst [vmem:[%s2067_s10 + $0x60] sm:$0xff] %v1015_v15  ;;  %v1018_v19 = vmul.f32 %v1582_v18, %v2131_v36 }
 0x1a6   : > { %v1586_v35 = vpop.eup %1585  ;;  %1063 = vst [vmem:[%s2067_s10 + $0xe0] sm:$0xff] %v1031_v31  ;;  %v1034_v11 = vmul.f32 %v1584_v10, %v2135_v42 }
 0x1a7   : > { %v1588_v26 = vpop.eup %1587  ;;  %1050 = vst [vmem:[%s2067_s10 + $0x78] sm:$0xff] %v1018_v19  ;;  %v1016_v32 = vmul.f32 %v1586_v35, %v2140_v17 }
 0x1a8   : > { %1066 = vst [vmem:[%s2067_s10 + $0xf8] sm:$0xff] %v1034_v11  ;;  %v1032_v22 = vmul.f32 %v1588_v26, %v2145_v51 }
 0x1a9   : > { %1048 = vst [vmem:[%s2067_s10 + $0x68] sm:$0xff] %v1016_v32 }
 0x1aa   : > { %1064 = vst [vmem:[%s2067_s10 + $0xe8] sm:$0xff] %v1032_v22 }
 0x1ab   : > { %1660 = shalt.err (!%p1657_p5)
}
 0x1ac   : > { %s1661_s29 = scalar_lea.hbm %s2190_s15, 4096  ;;  %s1665_s20 = scalar_lea.hbm %s2248_s3, 8192 }
 0x1ad   : > { %p1662_p9 = scmp.ne.s32.totalorder %s2190_s15, %s1661_s29  ;;  %p1666_p3 = scmp.lt.u32.totalorder %s2190_s15, %s2248_s3 }
 0x1ae   : > { %p1667_p7 = scmp.lt.u32.totalorder %s1665_s20, %s1661_s29  ;;  %p1669_p4 = scmp.lt.u32.totalorder %s1661_s29, %s2190_s15 }
 0x1af   : > { %p1663_p1 = pnand %p1662_p9, %p1861_p10 }
 0x1b0   : > { %p1668_p13 = por %p1667_p7, %p1666_p3 }
 0x1b1   : > { %p1664_p2 = pneg %p1663_p1 }
 0x1b2   : > { %p1670_p6 = por %p1669_p4, %p1668_p13 }
 0x1b4   : > { %p1671_p8 = pnand %p1670_p6, %p1664_p2 }
 0x1b6   : > { %1674 = shalt.err (!%p1671_p8)
}
 0x1b7   : > { %s1740_s10 = smov 128   ;;  %s1741_s11 = smov 8  }
 0x1b8   : > { %1365 = dma.vmem_to_hbm [thread:$0]  (%p1861_p10), %s2192_s9, 4096, %s2190_s15, %s1068_s25, %s1740_s10, %s1740_s10, %s1741_s11  }
 0x1b9 PF: > { %s1097_s18 = sand.u32 1, %s1713_s12   ;;  %p2266_p12 = scmp.ne.s32.totalorder %s2256_s23, 0 }
 0x1ba   : > { %p2267_p11 = scmp.ge.s32.totalorder %s1733_s17, 2  ;;  %s1098_s19 = scalar_lea.sflag [#allocation4], %s1097_s18 }
 0x1bc   : > { %p1376_p0 = pnand %p2267_p11, %p2266_p12 }
 0x1be   : > { %1708 = dma.done.wait (!%p1376_p0), %s1098_s19, 4096  }
 0x1bf   : > { %1710 = vsyncadd (!%p1376_p0), %s1098_s19, 4294963200  ;;  %s20_s17 = sadd.s32 1, %s1733_s17   ;;  %s2268_s12 = smov %s1717_s13 }
 0x1c0   : > { %p17_p5 = scmp.ge.s32.totalorder %s20_s17, 4   ;;  %s2269_s13 = smov %s1721_s14 }
 0x1c1   : > { %s2270_s14 = smov %s1870_s5  ;;  %s2271_s15 = smov %s1729_s16 }
 0x1c2   : > { %s2272_s16 = smov %s2274_s28  ;;  %19 = sbr.rel (!%p17_p5) target bundleno = 7 (0x7), region = 93 }
 0x1c9   :  { %1103 = vsyncpa [#allocation3], 1 }
 0x1ca   :  { %1105 = vsyncpa [#allocation3 + $0x1], 1 }
 0x1cb   :  { %1106 = vsyncpa [#allocation6], 1 }
 0x1cc   :  { %1107 = vsyncpa [#allocation4], 1 }
 0x1cd   :  { %1109 = vsyncpa [#allocation4 + $0x1], 1 }

</bundles_post_ra>
